<compile_context>
chip_gen: v6e
topology: v6e:2x2x1
jax: 0.10.0
libtpu: 0.0.40
codegen_flags: <defaults>
</compile_context>

<pallas_src>
import functools

import jax
import jax.numpy as jnp
from jax.experimental import pallas as pl
from jax.experimental.pallas import tpu as pltpu


# --------------------------------------------------------------------------
# pltpu.roll direction probe (robust across jax versions): we need
# result[j] = x[(j + offset) % n] and derive the shift argument accordingly.
# --------------------------------------------------------------------------
_ROLL_MATCHES_NUMPY = None


def _roll_matches_numpy():
    global _ROLL_MATCHES_NUMPY
    if _ROLL_MATCHES_NUMPY is None:
        def _k(x_ref, o_ref):
            o_ref[...] = pltpu.roll(x_ref[...], 1, 1)
        x = jnp.arange(8 * 128, dtype=jnp.float32).reshape(8, 128)
        out = pl.pallas_call(
            _k, out_shape=jax.ShapeDtypeStruct((8, 128), jnp.float32))(x)
        # np.roll convention: out[i] = in[i - shift]  ->  out[0, 0] == 127
        _ROLL_MATCHES_NUMPY = bool(out[0, 0] == 127.0)
    return _ROLL_MATCHES_NUMPY


def _roll_shift(offset, size, numpy_roll):
    """Shift to pass to pltpu.roll so that result[j] = x[(j + offset) % size]."""
    return (-offset) % size if numpy_roll else offset % size


# --------------------------------------------------------------------------
# In-kernel im2col for a 3x3 same-padded conv, lane-dense layout.
#   x2:       (Cin, H*W) value, spatial flattened on lanes.
#   slab_ref: (9*Cin, H*W) VMEM scratch;
#             slab[k*Cin+ci, h*W+w] = x[ci, h+kh-1, w+kw-1] (0 outside image),
#             with k = kh*3 + kw.
# --------------------------------------------------------------------------
def _im2col_to_slab(x2, slab_ref, H, W, numpy_roll):
    cin, hw = x2.shape
    pos = jax.lax.broadcasted_iota(jnp.int32, (1, hw), 1)
    hh = pos // W
    ww = pos % W
    for k in range(9):
        kh, kw = k // 3, k % 3
        off = (kh - 1) * W + (kw - 1)
        if off == 0:                                   # center tap, always valid
            chunk = x2
        else:
            rolled = pltpu.roll(x2, _roll_shift(off, hw, numpy_roll), 1)
            hin = hh + (kh - 1)
            win = ww + (kw - 1)
            valid = (hin >= 0) & (hin < H) & (win >= 0) & (win < W)
            chunk = jnp.where(valid, rolled, 0.0)
        slab_ref[pl.ds(k * cin, cin), :] = chunk


# --------------------------------------------------------------------------
# Fused kernel: conv1+ReLU -> 2x2 maxpool -> conv2+ReLU   (one batch per step)
# --------------------------------------------------------------------------
def fused_cnn_kernel(x_ref, w1_ref, b1_ref, w2_ref, b2_ref, pool_ref,
                     o_ref, slab1_ref, slab2_ref, *, H, W, numpy_roll):
    HW = H * W
    H2, W2 = H // 2, W // 2

    # conv1: single (C1, 9*Cin) x (9*Cin, HW) matmul on the MXU.
    x2 = x_ref[0]                                           # (Cin, HW)
    _im2col_to_slab(x2, slab1_ref, H, W, numpy_roll)
    a1 = jnp.dot(w1_ref[...], slab1_ref[...],
                 preferred_element_type=jnp.float32)        # (C1, HW)
    a1 = jnp.maximum(a1 + b1_ref[...], 0.0)

    # 2x2 maxpool stride 2: pairwise max via lane rolls, then pick the
    # (even h, even w) positions with an exact 0/1 selection matmul.
    m = jnp.maximum(a1, pltpu.roll(a1, _roll_shift(1, HW, numpy_roll), 1))
    m = jnp.maximum(m, pltpu.roll(m, _roll_shift(W, HW, numpy_roll), 1))
    p = jnp.dot(m, pool_ref[...],
                preferred_element_type=jnp.float32)         # (C1, HW/4)

    # conv2: single (C2, 9*C1) x (9*C1, HW/4) matmul.
    _im2col_to_slab(p, slab2_ref, H2, W2, numpy_roll)
    a2 = jnp.dot(w2_ref[...], slab2_ref[...],
                 preferred_element_type=jnp.float32)        # (C2, HW/4)
    a2 = jnp.maximum(a2 + b2_ref[...], 0.0)
    o_ref[0] = a2


def _make_pool_select(H, W, dtype=jnp.float32):
    """(H*W, H*W/4) 0/1 matrix selecting flat index of each 2x2 window's
    top-left element (where the window max already resides)."""
    HW = H * W
    H2, W2 = H // 2, W // 2
    q = jnp.arange(H2 * W2, dtype=jnp.int32)
    src = (q // W2) * (2 * W) + (q % W2) * 2
    return (jnp.arange(HW, dtype=jnp.int32)[:, None] == src[None, :]).astype(dtype)


# --------------------------------------------------------------------------
# Forward pass (PyTorch NCHW in / NCHW out).  Only metadata reshapes in the
# wrapper; no pads / transposes of activations.
# --------------------------------------------------------------------------
@functools.partial(jax.jit, static_argnames=("numpy_roll",))
def _cnn_forward_impl(x_nchw, w1_oihw, b1, w2_oihw, b2, *, numpy_roll):
    N, Cin, H, W = x_nchw.shape
    C1 = w1_oihw.shape[0]
    C2 = w2_oihw.shape[0]
    HW = H * W
    H2, W2 = H // 2, W // 2
    HW2 = H2 * W2

    x_flat = x_nchw.reshape(N, Cin, HW)                       # metadata-only
    # OIHW -> (Cout, kh, kw, Cin) -> (Cout, 9*Cin): matches slab row order.
    w1m = jnp.transpose(w1_oihw, (0, 2, 3, 1)).reshape(C1, 9 * Cin)
    w2m = jnp.transpose(w2_oihw, (0, 2, 3, 1)).reshape(C2, 9 * C1)
    b1c = b1.reshape(C1, 1)
    b2c = b2.reshape(C2, 1)
    pool_sel = _make_pool_select(H, W)

    kern = functools.partial(fused_cnn_kernel, H=H, W=W, numpy_roll=numpy_roll)
    out = pl.pallas_call(
        kern,
        out_shape=jax.ShapeDtypeStruct((N, C2, HW2), jnp.float32),
        grid=(N,),
        in_specs=[
            pl.BlockSpec((1, Cin, HW), lambda n: (n, 0, 0)),
            pl.BlockSpec((C1, 9 * Cin), lambda n: (0, 0)),
            pl.BlockSpec((C1, 1), lambda n: (0, 0)),
            pl.BlockSpec((C2, 9 * C1), lambda n: (0, 0)),
            pl.BlockSpec((C2, 1), lambda n: (0, 0)),
            pl.BlockSpec((HW, HW2), lambda n: (0, 0)),
        ],
        out_specs=pl.BlockSpec((1, C2, HW2), lambda n: (n, 0, 0)),
        scratch_shapes=[
            pltpu.VMEM((9 * Cin, HW), jnp.float32),   # conv1 im2col slab
            pltpu.VMEM((9 * C1, HW2), jnp.float32),   # conv2 im2col slab
        ],
        compiler_params=pltpu.CompilerParams(
            dimension_semantics=("parallel",)),
    )(x_flat, w1m, b1c, w2m, b2c, pool_sel)
    return out.reshape(N, C2, H2, W2)


def cnn_forward(x_nchw, w1_oihw, b1, w2_oihw, b2):
    return _cnn_forward_impl(x_nchw, w1_oihw, b1, w2_oihw, b2,
                             numpy_roll=_roll_matches_numpy())


def ref_forward(x, w1, b1, w2, b2):
    """Pure-JAX (XLA) reference, NCHW semantics identical to PyTorch."""
    y = jax.lax.conv_general_dilated(
        x, w1, (1, 1), ((1, 1), (1, 1)),
        dimension_numbers=("NCHW", "OIHW", "NCHW"))
    y = jax.nn.relu(y + b1[None, :, None, None])
    y = jax.lax.reduce_window(y, -jnp.inf, jax.lax.max,
                              (1, 1, 2, 2), (1, 1, 2, 2), "VALID")
    y = jax.lax.conv_general_dilated(
        y, w2, (1, 1), ((1, 1), (1, 1)),
        dimension_numbers=("NCHW", "OIHW", "NCHW"))
    y = jax.nn.relu(y + b2[None, :, None, None])
    return y


if __name__ == "__main__":
    key = jax.random.PRNGKey(0)
    k1, k2, k3, k4, k5 = jax.random.split(key, 5)

    # 3-channel 32x32 images (32x32 is what fc1's 32*16*16 input implies
    # after one 2x2 pool), small batch.
    N, Cin, H, W = 2, 3, 32, 32
    x = jax.random.normal(k1, (N, Cin, H, W), jnp.float32)

    # Deterministic synthetic parameters (PyTorch OIHW convention).
    w1 = jax.random.normal(k2, (16, 3, 3, 3), jnp.float32) * 0.1
    b1 = jax.random.normal(k3, (16,), jnp.float32) * 0.1
    w2 = jax.random.normal(k4, (32, 16, 3, 3), jnp.float32) * 0.05
    b2 = jax.random.normal(k5, (32,), jnp.float32) * 0.05

    out = cnn_forward(x, w1, b1, w2, b2)
    out = jax.block_until_ready(out)
    assert out.shape == (N, 32, H // 2, W // 2), out.shape

    ref = ref_forward(x, w1, b1, w2, b2)
    max_err = float(jnp.max(jnp.abs(out - ref)))
    assert jnp.allclose(out, ref, atol=1e-4, rtol=1e-4), max_err

    print("KERNEL_OK")
</pallas_src>

<mosaic_0001>
module attributes {stable_mosaic.version = 11 : i64} {
  func.func @_k(%arg0: memref<8x128xf32, #tpu.memory_space<vmem>>, %arg1: memref<8x128xf32, #tpu.memory_space<vmem>>) attributes {dimension_semantics = [], scalar_prefetch = 0 : i64, scratch_operands = 0 : i64, tpu.core_type = #tpu.core_type<tc>} {
    %c0 = arith.constant 0 : index
    %c0_0 = arith.constant 0 : index
    %0 = vector.load %arg0[%c0, %c0_0] : memref<8x128xf32, #tpu.memory_space<vmem>>, vector<8x128xf32>
    %c1_i32 = arith.constant 1 : i32
    %1 = tpu.dynamic_rotate %0 by %c1_i32 dim 1 : vector<8x128xf32>, i32 -> vector<8x128xf32>
    %c0_1 = arith.constant 0 : index
    %c0_2 = arith.constant 0 : index
    %2 = vector.load %arg1[%c0_1, %c0_2] : memref<8x128xf32, #tpu.memory_space<vmem>>, vector<8x128xf32>
    tpu.vector_store %arg1[%c0_1, %c0_2], %1 {strides = array<i32>} : memref<8x128xf32, #tpu.memory_space<vmem>>, vector<8x128xf32>,
    return
  }
}

</mosaic_0001>

<bundles_post_ra>
// kernel: tpu_custom_call.1
= control target key start
LH: loop header
LB: loop body
LE: loop exit
PB: predicated region body
PF: predicated region fallthrough
CT: control target
= control target key end

     0   :  { %6 = vsyncpa [#allocation3], 0  ;;  %s106_s0 = inlined_call_operand.hbm [shape: f32[8,128], index: 0, kind: input, shape index: {}]   ;;  %s107_s1 = inlined_call_operand.hbm [shape: f32[8,128], index: 1, kind: output, shape index: {}]  }
   0x1   :  { %7 = vsyncpa [#allocation4], 0  ;;  %s87_s6 = smov [#allocation2]  }
   0x2   :  { %s14_s7 = sshll.u32 %s87_s6, 4  ;;  %s15_s7 = int_to_ptr.vmem [resolvable:$true] %s14_s7 }
   0x3   :  { %s51_s8 = scalar_lea.vmem %s15_s7, 128  ;;  %p56_p1 = scmp.lt.s32.totalorder %s15_s7, %s15_s7 }
   0x4   :  { %p52_p0 = scmp.ne.s32.totalorder %s15_s7, %s51_s8  ;;  %p57_p2 = scmp.lt.s32.totalorder %s51_s8, %s51_s8 }
   0x6   :  { %p58_p3 = por %p57_p2, %p56_p1 }
   0x8   :  { %p59_p4 = pnand %p58_p3, %p52_p0 }
   0xa   :  { %62 = shalt.err (!%p59_p4)
}
   0xb   :  { %17 = dma.hbm_to_vmem [thread:$0]  %s106_s0, 128, %s15_s7, [#allocation3]  }
   0xc   :  { %83 = dma.done.wait [#allocation3], 128  }
   0xd   :  { %84 = vsyncadd [#allocation3], 4294967168  ;;  %v21_v0 = vld [vmem:[#allocation2] sm:$0xff]  ;;  %s88_s11 = smov 1   ;;  %s89_s12 = smov [#allocation5]  }
   0xe   :  { %22 = vrot.lane.b32.xlu0 %v21_v0, %s88_s11  ;;  %s31_s13 = sshll.u32 %s89_s12, 4  ;;  %s32_s13 = int_to_ptr.vmem [resolvable:$true] %s31_s13 }
   0xf   :  { %s63_s14 = scalar_lea.vmem %s32_s13, 128  ;;  %p68_p6 = scmp.lt.s32.totalorder %s32_s13, %s32_s13 }
  0x10   :  { %p64_p5 = scmp.ne.s32.totalorder %s32_s13, %s63_s14  ;;  %p69_p7 = scmp.lt.s32.totalorder %s63_s14, %s63_s14 }
  0x12   :  { %p70_p8 = por %p69_p7, %p68_p6 }
  0x14   :  { %p71_p9 = pnand %p70_p8, %p64_p5 }
  0x80   :  { %v23_v1 = vpop.permute.xlu0 %22 }
  0x81   :  { %24 = vst [vmem:[#allocation5] sm:$0xff] %v23_v1 }
  0x82   :  { %74 = shalt.err (!%p71_p9)
}
  0x83   :  { %34 = dma.vmem_to_hbm [thread:$0]  %s32_s13, 128, %s107_s1, [#allocation4]  }
  0x84   :  { %85 = dma.done.wait [#allocation4], 128  }
  0x85   :  { %86 = vsyncadd [#allocation4], 4294967168 }
  0x86   :  { %38 = vsyncpa [#allocation3], 1 }
  0x87   :  { %39 = vsyncpa [#allocation4], 1 }

</bundles_post_ra>
